<compile_context>
chip_gen: v5e
topology: v5e:2x2
jax: 0.10.0
libtpu: 0.0.40
codegen_flags: <defaults>
</compile_context>

<pallas_src>
from functools import partial

import jax
import jax.numpy as jnp
from jax import lax
from jax.experimental import pallas as pl
from jax.experimental.pallas import tpu as pltpu


_VMEM_LIMIT = 32 * 1024 * 1024   # safe on v5e/v6e (128 MiB) and v7x (64 MiB)


# ----------------------------- linear kernels ------------------------------

def _linear_kernel(x_ref, w_ref, b_ref, o_ref):
    # Single-K-step y = x @ w + b (K taken whole; no accumulator revolve).
    acc = jnp.dot(x_ref[...], w_ref[...], preferred_element_type=jnp.float32)
    o_ref[...] = (acc + b_ref[...].astype(jnp.float32)).astype(o_ref.dtype)


def _linear_kernel_ktiled(x_ref, w_ref, b_ref, o_ref, acc_ref):
    # K-tiled y = x @ w + b with an f32 VMEM accumulator (only used for very
    # large K; the module at hand always takes the full-K path above).
    @pl.when(pl.program_id(2) == 0)
    def _():
        acc_ref[...] = jnp.zeros_like(acc_ref)

    acc_ref[...] += jnp.dot(x_ref[...], w_ref[...],
                            preferred_element_type=jnp.float32)

    @pl.when(pl.program_id(2) == pl.num_programs(2) - 1)
    def _():
        o_ref[...] = (acc_ref[...] + b_ref[...].astype(jnp.float32)
                      ).astype(o_ref.dtype)


# ---------------------------- attention kernels -----------------------------

def _one_head_attention(qh, kh, vh, *, scale, bf16_exp):
    """Per-head softmax(q k^T) v with f32 stats; returns f32 (P, hd)."""
    qh = qh * scale                                     # fold scale into q
    s = lax.dot_general(qh, kh, (((1,), (1,)), ((), ())),
                        preferred_element_type=jnp.float32)   # (P, P) f32
    m = jnp.max(s, axis=-1, keepdims=True)
    sm = s - m
    # exp in bf16 on bf16 inputs (v6e/v7x EUP); max/sum accumulation stays f32.
    p = jnp.exp(sm.astype(jnp.bfloat16)) if bf16_exp else jnp.exp(sm)
    denom = jnp.sum(p, axis=-1, keepdims=True, dtype=jnp.float32)   # (P, 1)
    ctx = jnp.dot(p.astype(vh.dtype), vh,
                  preferred_element_type=jnp.float32)               # (P, hd)
    # Normalize the (P, hd) context instead of the (P, P) probabilities;
    # approx reciprocal runs on the EUP slot.
    return ctx * pl.reciprocal(denom, approx=True)


def _attn_heads_kernel(q_ref, k_ref, v_ref, o_ref, ctx_ref, *,
                       scale, head_dim, heads_per_step, bf16_exp):
    # One (batch, head-group) per grid step.
    # q_ref/k_ref/v_ref: (P, hg*hd) lane-dense blocks; o_ref: (P, hg*hd).
    for i in range(heads_per_step):                     # hg is small (1/2/4)
        sl = slice(i * head_dim, (i + 1) * head_dim)
        ctx_ref[:, sl] = _one_head_attention(
            q_ref[:, sl], k_ref[:, sl], v_ref[:, sl],
            scale=scale, bf16_exp=bf16_exp)
    # Single dense, lane-aligned store of the whole head group.
    o_ref[...] = ctx_ref[...].astype(o_ref.dtype)


def _attn_batch_kernel(qkv_ref, o_ref, ctx_ref, *,
                       scale, head_dim, num_heads, bf16_exp):
    # Fallback for tiny dims (hg*hd can't reach 128 lanes): one batch per
    # step, full-extent blocks (always layout-legal).  qkv_ref: (P, 3E).
    emb = num_heads * head_dim
    for h in range(num_heads):
        sl = slice(h * head_dim, (h + 1) * head_dim)
        qh = qkv_ref[:, h * head_dim:(h + 1) * head_dim]
        kh = qkv_ref[:, emb + h * head_dim: emb + (h + 1) * head_dim]
        vh = qkv_ref[:, 2 * emb + h * head_dim: 2 * emb + (h + 1) * head_dim]
        ctx_ref[:, sl] = _one_head_attention(qh, kh, vh,
                                             scale=scale, bf16_exp=bf16_exp)
    o_ref[...] = ctx_ref[...].astype(o_ref.dtype)


# ------------------------------- tiling helpers -----------------------------

def _round_up(x, m):
    return ((x + m - 1) // m) * m


def _sublane_align(dtype):
    # 8 for 4-byte, 16 for bf16/f16, 32 for int8/fp8.
    return max(8, 32 // jnp.dtype(dtype).itemsize)


def _pick_tile(dim, target, aligns=(256, 128)):
    """Largest aligned tile <= target that exactly divides `dim`; else full."""
    if dim <= target:
        return dim
    for align in aligns:
        t = (target // align) * align
        while t >= align:
            if dim % t == 0:
                return t
            t -= align
    return dim                      # full-extent block is always legal


def _choose_tm(m, target, sub):
    """Row tile: big tiles preferred, padding waste capped at ~1/16 of M."""
    if m <= target:
        return _round_up(m, sub)
    for t in (target, target // 2, target // 4, 128):
        t = max(_round_up(t, sub), sub)
        if (_round_up(m, t) - m) * 16 <= m:
            return t
    return max(_round_up(128, sub), sub)


def _choose_head_group(num_heads, head_dim):
    """Smallest divisor of H whose lane width hg*hd is a multiple of 128."""
    for hg in range(1, num_heads + 1):
        if num_heads % hg == 0 and (hg * head_dim) % 128 == 0:
            return hg
    return None


# ------------------------------- linear wrapper -----------------------------

def _pallas_linear(x2d, w, b=None, *, tm_target=512, tn_target=512,
                   tk_full_max=2048):
    """Tiled, pipelined y = x2d @ w (+ b).  x2d: (M, K), w: (K, N)."""
    m, k = x2d.shape
    n = w.shape[1]
    dt = x2d.dtype
    sub = _sublane_align(dt)

    tm = _choose_tm(m, tm_target, sub)
    mp = _round_up(m, tm)
    if mp != m:
        x2d = jnp.pad(x2d, ((0, mp - m), (0, 0)))      # pad M to tile multiple

    tn = _pick_tile(n, tn_target, (256, 128))          # 256 first: v6e/v7x MXU
    tk = k if k <= tk_full_max else _pick_tile(k, tk_full_max, (256, 128))

    b = jnp.zeros((1, n), jnp.float32) if b is None else b.reshape(1, n)

    msteps, nsteps, ksteps = mp // tm, n // tn, k // tk
    out_shape = jax.ShapeDtypeStruct((mp, n), dt)

    if ksteps == 1:
        out = pl.pallas_call(
            _linear_kernel,
            out_shape=out_shape,
            grid=(msteps, nsteps),
            in_specs=[pl.BlockSpec((tm, k), lambda i, j: (i, 0)),
                      pl.BlockSpec((k, tn), lambda i, j: (0, j)),
                      pl.BlockSpec((1, tn), lambda i, j: (0, j))],
            out_specs=pl.BlockSpec((tm, tn), lambda i, j: (i, j)),
            compiler_params=pltpu.CompilerParams(
                dimension_semantics=("parallel", "parallel"),
                vmem_limit_bytes=_VMEM_LIMIT),
        )(x2d, w, b)
    else:
        out = pl.pallas_call(
            _linear_kernel_ktiled,
            out_shape=out_shape,
            grid=(msteps, nsteps, ksteps),
            in_specs=[pl.BlockSpec((tm, tk), lambda i, j, kk: (i, kk)),
                      pl.BlockSpec((tk, tn), lambda i, j, kk: (kk, j)),
                      pl.BlockSpec((1, tn), lambda i, j, kk: (0, j))],
            out_specs=pl.BlockSpec((tm, tn), lambda i, j, kk: (i, j)),
            scratch_shapes=[pltpu.VMEM((tm, tn), jnp.float32)],
            compiler_params=pltpu.CompilerParams(
                dimension_semantics=("parallel", "parallel", "arbitrary"),
                vmem_limit_bytes=_VMEM_LIMIT),
        )(x2d, w, b)

    return out if mp == m else out[:m]


# ------------------------------- forward pass -------------------------------

def mh_attention(x, w_qkv_t, w_proj_t, b_proj, *, num_heads, bf16_exp=None):
    """Forward pass of MHAttention.

    x:        (bs, patches, dim)
    w_qkv_t:  (dim, 3*dim)  -- qkv weight, pre-transposed (Linear does x @ W^T)
    w_proj_t: (dim, dim)    -- proj weight, pre-transposed
    b_proj:   (dim,) or (1, dim)
    """
    bs, P, E = x.shape
    hd = E // num_heads
    scale = hd ** (-0.5)
    if bf16_exp is None:
        bf16_exp = (x.dtype == jnp.bfloat16)

    # ---- qkv projection (tiled Pallas matmul, no bias) ----
    x2d = x.reshape(bs * P, E)                               # free reshape
    qkv = _pallas_linear(x2d, w_qkv_t)                       # (bs*P, 3E)
    qkv3 = qkv.reshape(bs, P, 3 * E)                         # free reshape

    # ---- attention: grid over (batch, head-group) ----
    hg = _choose_head_group(num_heads, hd)
    if hg is not None:
        lane_w = hg * hd                                     # multiple of 128
        gsteps = num_heads // hg
        attn_out = pl.pallas_call(
            partial(_attn_heads_kernel, scale=scale, head_dim=hd,
                    heads_per_step=hg, bf16_exp=bf16_exp),
            out_shape=jax.ShapeDtypeStruct((bs, P, E), x.dtype),
            grid=(bs, gsteps),
            in_specs=[
                # q / k / v head-group blocks gathered from the flat qkv slab.
                pl.BlockSpec((None, P, lane_w), lambda b, g: (b, 0, g)),
                pl.BlockSpec((None, P, lane_w),
                             lambda b, g: (b, 0, gsteps + g)),
                pl.BlockSpec((None, P, lane_w),
                             lambda b, g: (b, 0, 2 * gsteps + g)),
            ],
            out_specs=pl.BlockSpec((None, P, lane_w), lambda b, g: (b, 0, g)),
            scratch_shapes=[pltpu.VMEM((P, lane_w), jnp.float32)],
            compiler_params=pltpu.CompilerParams(
                dimension_semantics=("parallel", "parallel"),
                vmem_limit_bytes=_VMEM_LIMIT),
        )(qkv3, qkv3, qkv3)
    else:
        # Tiny-dim fallback: whole batch per step, full-extent blocks.
        attn_out = pl.pallas_call(
            partial(_attn_batch_kernel, scale=scale, head_dim=hd,
                    num_heads=num_heads, bf16_exp=bf16_exp),
            out_shape=jax.ShapeDtypeStruct((bs, P, E), x.dtype),
            grid=(bs,),
            in_specs=[pl.BlockSpec((None, P, 3 * E), lambda b: (b, 0, 0))],
            out_specs=pl.BlockSpec((None, P, E), lambda b: (b, 0, 0)),
            scratch_shapes=[pltpu.VMEM((P, E), jnp.float32)],
            compiler_params=pltpu.CompilerParams(
                dimension_semantics=("parallel",),
                vmem_limit_bytes=_VMEM_LIMIT),
        )(qkv3)

    # ---- output projection (tiled Pallas matmul, fused bias) ----
    y = _pallas_linear(attn_out.reshape(bs * P, E), w_proj_t, b_proj)
    return y.reshape(bs, P, E)


# -------------------------------- reference ---------------------------------

def mh_attention_ref(x, w_qkv, w_proj, b_proj, *, num_heads):
    """Pure-JAX reference mirroring the PyTorch forward exactly."""
    bs, P, E = x.shape
    hd = E // num_heads
    scale = hd ** (-0.5)
    qkv = jnp.einsum('bpe,oe->bpo', x, w_qkv)                # Linear, no bias
    qkv = qkv.reshape(bs, P, 3, num_heads, hd).transpose(2, 0, 3, 1, 4)
    q, k, v = qkv[0], qkv[1], qkv[2]
    attn = jnp.einsum('bhpd,bhqd->bhpq', q, k) * scale
    attn = jax.nn.softmax(attn, axis=-1)
    out = jnp.einsum('bhpq,bhqd->bhpd', attn, v)
    out = out.transpose(0, 2, 1, 3).reshape(bs, P, E)
    return jnp.einsum('bpe,oe->bpo', out, w_proj) + b_proj


# ----------------------------------- main ------------------------------------

if __name__ == "__main__":
    def run_case(bs, patches, dim, num_heads, seed):
        key = jax.random.PRNGKey(seed)
        kx, kq, kp, kb = jax.random.split(key, 4)
        x = jax.random.normal(kx, (bs, patches, dim), jnp.float32)
        # PyTorch nn.Linear weights are (out_features, in_features)
        w_qkv = jax.random.normal(kq, (3 * dim, dim), jnp.float32) * 0.02
        w_proj = jax.random.normal(kp, (dim, dim), jnp.float32) * 0.02
        b_proj = jax.random.normal(kb, (dim,), jnp.float32) * 0.02

        y = mh_attention(x, w_qkv.T, w_proj.T, b_proj, num_heads=num_heads)
        y = jax.block_until_ready(y)

        y_ref = mh_attention_ref(x, w_qkv, w_proj, b_proj, num_heads=num_heads)
        assert y.shape == (bs, patches, dim)
        err = jnp.max(jnp.abs(y - y_ref))
        assert jnp.allclose(y, y_ref, rtol=2e-2, atol=2e-2), (
            f"mismatch (bs={bs}, P={patches}, E={dim}, H={num_heads}): "
            f"max abs err {err}")

    # Small smoke test (whole-batch fallback attention path, full-K matmuls).
    run_case(bs=2, patches=8, dim=32, num_heads=8, seed=0)
    # Tiled case (head-group attention grid, 2 heads/128 lanes per step,
    # multi-step M/N matmul tiling).
    run_case(bs=4, patches=256, dim=256, num_heads=4, seed=1)

    print("KERNEL_OK")
</pallas_src>

<mosaic_0001>
module attributes {stable_mosaic.version = 11 : i64} {
  func.func @_linear_kernel(%arg0: i32, %arg1: i32, %arg2: memref<16x32xf32, #tpu.memory_space<vmem>>, %arg3: memref<32x96xf32, #tpu.memory_space<vmem>>, %arg4: memref<1x96xf32, #tpu.memory_space<vmem>>, %arg5: memref<16x96xf32, #tpu.memory_space<vmem>>) attributes {dimension_semantics = [#tpu.dimension_semantics<parallel>, #tpu.dimension_semantics<parallel>], iteration_bounds = array<i64: 1, 1>, scalar_prefetch = 0 : i64, scratch_operands = 0 : i64, tpu.core_type = #tpu.core_type<tc>, window_params = [{transform_indices = @transform_0, window_bounds = array<i64: 16, 32>}, {transform_indices = @transform_1, window_bounds = array<i64: 32, 96>}, {transform_indices = @transform_2, window_bounds = array<i64: 1, 96>}, {transform_indices = @transform_3, window_bounds = array<i64: 16, 96>}]} {
    %c0 = arith.constant 0 : index
    %c0_0 = arith.constant 0 : index
    %0 = vector.load %arg2[%c0, %c0_0] : memref<16x32xf32, #tpu.memory_space<vmem>>, vector<16x32xf32>
    %c0_1 = arith.constant 0 : index
    %c0_2 = arith.constant 0 : index
    %1 = vector.load %arg3[%c0_1, %c0_2] : memref<32x96xf32, #tpu.memory_space<vmem>>, vector<32x96xf32>
    %cst = arith.constant dense<0.000000e+00> : vector<16x96xf32>
    %2 = tpu.matmul %0, %1, %cst {dimension_numbers = #tpu.dot_dimension_numbers<[1], [0], [0], [1], [0, 0, 1, 1], [], []>} : vector<16x32xf32>, vector<32x96xf32>, vector<16x96xf32> -> vector<16x96xf32>
    %c0_3 = arith.constant 0 : index
    %c0_4 = arith.constant 0 : index
    %3 = vector.load %arg4[%c0_3, %c0_4] : memref<1x96xf32, #tpu.memory_space<vmem>>, vector<1x96xf32>
    %4 = vector.broadcast %3 : vector<1x96xf32> to vector<16x96xf32>
    %5 = arith.addf %2, %4 : vector<16x96xf32>
    %c0_5 = arith.constant 0 : index
    %c0_6 = arith.constant 0 : index
    %6 = vector.load %arg5[%c0_5, %c0_6] : memref<16x96xf32, #tpu.memory_space<vmem>>, vector<16x96xf32>
    tpu.vector_store %arg5[%c0_5, %c0_6], %5 {strides = array<i32>} : memref<16x96xf32, #tpu.memory_space<vmem>>, vector<16x96xf32>,
    return
  }
  func.func @transform_0(%arg0: i32, %arg1: i32) -> (i32, i32) {
    %c0_i32 = arith.constant 0 : i32
    %c0_i32_0 = arith.constant 0 : i32
    return %arg0, %c0_i32 : i32, i32
  }
  func.func @transform_1(%arg0: i32, %arg1: i32) -> (i32, i32) {
    %c0_i32 = arith.constant 0 : i32
    %c0_i32_0 = arith.constant 0 : i32
    return %c0_i32, %arg1 : i32, i32
  }
  func.func @transform_2(%arg0: i32, %arg1: i32) -> (i32, i32) {
    %c0_i32 = arith.constant 0 : i32
    %c0_i32_0 = arith.constant 0 : i32
    return %c0_i32, %arg1 : i32, i32
  }
  func.func @transform_3(%arg0: i32, %arg1: i32) -> (i32, i32) {
    %c0_i32 = arith.constant 0 : i32
    return %arg0, %arg1 : i32, i32
  }
}

</mosaic_0001>

<bundles_post_ra>
// kernel: tpu_custom_call.1
= control target key start
LH: loop header
LB: loop body
LE: loop exit
PB: predicated region body
PF: predicated region fallthrough
CT: control target
= control target key end

     0   :  { %8 = vsyncpa [#allocation3], 0  ;;  %s246_s0 = inlined_call_operand.hbm [shape: f32[16,32], index: 0, kind: input, shape index: {}]   ;;  %s247_s1 = inlined_call_operand.hbm [shape: f32[32,96], index: 1, kind: input, shape index: {}]   ;;  %s248_s2 = inlined_call_operand.vmem [shape: f32[1,96], index: 2, kind: input, shape index: {}]   ;;  %s249_s3 = inlined_call_operand.hbm [shape: f32[16,96], index: 3, kind: output, shape index: {}]  }
   0x1   :  { %9 = vsyncpa [#allocation6], 0 }
   0x2   :  { %10 = vsyncpa [#allocation4], 0  ;;  %s15_s14 = sshll.u32 %s246_s0, 4  ;;  %s200_s15 = smov [#allocation2]   ;;  %s16_s14 = int_to_ptr.hbm [resolvable:$true] %s15_s14 }
   0x3   :  { %s17_s16 = sshll.u32 %s200_s15, 4  ;;  %s28_s19 = sshll.u32 %s247_s1, 4  ;;  %s18_s16 = int_to_ptr.vmem [resolvable:$true] %s17_s16  ;;  %s29_s19 = int_to_ptr.hbm [resolvable:$true] %s28_s19 }
   0x4   :  { %s201_s20 = smov 128   ;;  %s202_s21 = smov 8  }
   0x5   :  { %23 = dma.hbm_to_vmem [thread:$0]  %s16_s14, 256, %s18_s16, [#allocation3], %s201_s20, %s201_s20, %s202_s21  }
   0x6   :  { %s203_s22 = smov [#allocation5]  }
   0x7   :  { %s30_s23 = sshll.u32 %s203_s22, 4  ;;  %s31_s23 = int_to_ptr.vmem [resolvable:$true] %s30_s23 }
   0x8   :  { %36 = dma.hbm_to_vmem [thread:$0]  %s29_s19, 512, %s31_s23, [#allocation6], %s201_s20, %s201_s20, %s202_s21  }
   0x9   :  { %194 = dma.done.wait [#allocation3], 256  }
   0xa   :  { %195 = vsyncadd [#allocation3], 4294967040 }
   0xb   :  { %196 = dma.done.wait [#allocation6], 512  }
   0xc   :  { %197 = vsyncadd [#allocation6], 4294966784  ;;  %v52_v0 = vld [vmem:[#allocation5 + $0x18] sm:$0xff]  ;;  %v51_v1 = vld [vmem:[#allocation5 + $0x10] sm:$0xff]  ;;  %vm57_vm0 = vcmask 261120   ;;  %s204_s24 = smov [#allocation7]  }
   0xd   :  { %76 = vmatpush.msra.mxu0 %v52_v0  ;;  %112 = vmatpush.msra.mxu1 %v52_v0  ;;  %v50_v2 = vld [vmem:[#allocation5 + $0x8] sm:$0xff]  ;;  %v49_v3 = vld [vmem:[#allocation5] sm:$0xff]  ;;  %v47_v4 = vld [vmem:[#allocation2] sm:$0xff]  ;;  %s94_s25 = sshll.u32 %s204_s24, 4  ;;  %s96_s28 = sshll.u32 %s249_s3, 4  ;;  %vm87_vm1 = vcmask 785408   ;;  %s95_s25 = int_to_ptr.vmem [resolvable:$true] %s94_s25  ;;  %s97_s28 = int_to_ptr.hbm [resolvable:$true] %s96_s28 }
   0xe   :  { %v48_v5 = vld [vmem:[#allocation2 + $0x8] sm:$0xff]  ;;  %v121_v6 = vld [vmem:[%s248_s2] ss:$0 sm:$0xff] }
   0xf   :  { %77 = vmatpush.msra.mxu0 %v51_v1  ;;  %113 = vmatpush.msra.mxu1 %v51_v1 }
  0x11   :  { %78 = vmatpush.msra.mxu0 %v50_v2  ;;  %114 = vmatpush.msra.mxu1 %v50_v2 }
  0x13   :  { %79 = vmatpush.msra.mxu0 %v49_v3  ;;  %115 = vmatpush.msra.mxu1 %v49_v3 }
  0x14   :  { %110 = vmatmul.msk.f32.vlgmr.msra.gmra.mxu0 %vm57_vm0, %v47_v4  ;;  %111 = vmatmul.msk.f32.vlgmr.msra.gmra.mxu1 %vm57_vm0, %v48_v5 }
  0x91   :  { %v81_v7 = vpop.f32.mrf.mxu0  ;;  %v84_v8 = vpop.f32.mrf.mxu1 }
  0x92   :  { %v82_v9 = vadd.f32 %v121_v6, %v81_v7  ;;  %v85_v10 = vadd.f32 %v121_v6, %v84_v8 }
  0x94   :  { %88 = vst.msk [vmem:[#allocation7] sm:$0xff] %vm87_vm1, %v82_v9 }
  0x95   :  { %89 = vst.msk [vmem:[#allocation7 + $0x8] sm:$0xff] %vm87_vm1, %v85_v10 }
  0x96   :  { %102 = dma.vmem_to_hbm [thread:$0]  %s95_s25, 256, %s97_s28, [#allocation4], %s201_s20, %s201_s20, %s202_s21  }
  0x97   :  { %198 = dma.done.wait [#allocation4], 256  }
  0x98   :  { %199 = vsyncadd [#allocation4], 4294967040 }
  0x99   :  { %107 = vsyncpa [#allocation3], 1 }
  0x9a   :  { %108 = vsyncpa [#allocation6], 1 }
  0x9b   :  { %109 = vsyncpa [#allocation4], 1 }

</bundles_post_ra>
